<compile_context>
chip_gen: v5e
topology: v5e:2x2
jax: 0.10.0
libtpu: 0.0.40
codegen_flags: <defaults>
</compile_context>

<pallas_src>
import jax
import jax.numpy as jnp
from jax.experimental import pallas as pl
from jax.experimental.pallas import tpu as pltpu


_LANE = 128
_SUBLANE_BY_ITEMSIZE = {4: 8, 2: 16, 1: 32}   # f32 / bf16 / int8-fp8


def _sublane_req(*dtypes):
    # The sublane (second-to-last block dim) requirement is set by the
    # narrowest dtype touching the block layout (bf16 -> 16, int8 -> 32).
    return max(_SUBLANE_BY_ITEMSIZE.get(jnp.dtype(d).itemsize, 8) for d in dtypes)


def _round_up(v, m):
    return ((v + m - 1) // m) * m


def _add_rows_kernel(x_ref, pos_ref, o_ref):
    # Batch dim squeezed away by the BlockSpec: all refs are (tR, C).
    o_ref[...] = x_ref[...].astype(o_ref.dtype) + pos_ref[...].astype(o_ref.dtype)


def _add_batched_kernel(x_ref, pos_ref, o_ref):
    # x/o are (nB, R, C), pos is (R, C): broadcast over the packed batch axis.
    o_ref[...] = (x_ref[...].astype(o_ref.dtype)
                  + pos_ref[...].astype(o_ref.dtype)[None, :, :])


def learned_positional_embedding(x, weight, index=None, *, donate_x=False,
                                 target_block_bytes=None):
    """x: (..., S, D); weight: (N, D); index: optional (S,) int array."""
    orig_shape = x.shape
    assert x.ndim >= 2, "x must have at least (seq, dim) dims"
    S, D = int(orig_shape[-2]), int(orig_shape[-1])
    N, Dw = weight.shape
    assert Dw == D, "weight last dim must match x last dim"

    B = 1
    for d in orig_shape[:-2]:
        B *= int(d)
    x3 = x.reshape(B, S, D)

    out_dtype = jnp.result_type(x.dtype, weight.dtype)   # torch-style promotion

    # ----- positional rows (S, D) --------------------------------------------
    if index is not None:
        # Gather glue: moves only S*D bytes (negligible vs B*S*D activations).
        # TODO(synk): torch raises on out-of-range indices; jnp.take clamps.
        # TODO(synk): for the decode case index == offset + arange(S), this
        # gather could be skipped by scalar-prefetching `offset` into the pos
        # index_map (PrefetchScalarGridSpec); kept generic here.
        pos_rows = jnp.take(weight, jnp.asarray(index), axis=0)      # (S, D)
        want_direct_weight = False
    else:
        pos_rows = None                      # may pass the full table directly
        want_direct_weight = True

    # ----- lane-dense layout ---------------------------------------------------
    lane_fold = False
    pad_d = 0
    if D % _LANE == 0:
        R, C = S, D
    elif (S * D) % _LANE == 0:
        lane_fold = True                     # free reshape, fully lane-dense
        R, C = (S * D) // _LANE, _LANE
        want_direct_weight = False
    else:
        # Neither D nor S*D is lane-aligned: pad D up to a multiple of 128 so
        # every store is an unmasked full-lane vst (masked vst.msk stores are
        # the single biggest measured lever). Costs one pad/slice pass.
        pad_d = _round_up(D, _LANE) - D
        R, C = S, D + pad_d
        want_direct_weight = False

    # ----- per-buffer block budget (generation-aware) -------------------------
    try:
        vmem_cap = int(pltpu.get_tpu_info().vmem_capacity_bytes)
    except Exception:
        vmem_cap = 128 * 1024 * 1024
    if target_block_bytes is None:
        # ~4 MiB per stream buffer: 3 streams x 2 buffers ~= 24 MiB, safely
        # inside v7x's 64 MiB physical VMEM and well inside v5e/v6e's 128 MiB.
        target_block_bytes = min(4 * 1024 * 1024,
                                 max(512 * 1024, vmem_cap // 16))

    itm_x = jnp.dtype(x.dtype).itemsize
    itm_w = jnp.dtype(weight.dtype).itemsize
    itm_o = jnp.dtype(out_dtype).itemsize
    sub = _sublane_req(x.dtype, weight.dtype, out_dtype)
    wide = max(itm_x, itm_o)

    slab_bytes = R * C * wide                # one batch element, widest stream
    if slab_bytes >= target_block_bytes:
        # Big per-batch slab: tile rows, one batch element per block.
        nB = 1
        rows_budget = max(1, target_block_bytes // (C * wide))
        tR = min(R, max(sub, (rows_budget // sub) * sub))
        if R <= sub:
            tR = R                           # full dim -> always legal
    else:
        # Small per-batch slab: pack several batch elements into one block.
        tR = R
        nB = max(1, min(B, target_block_bytes // max(1, slab_bytes)))

    num_row_tiles = pl.cdiv(R, tR)
    num_batch_tiles = pl.cdiv(B, nB)

    # Guarantee >= 2 grid units when the shape allows, so both v7x TensorCores
    # get work (harmless one extra grid step on single-core chips).
    if num_row_tiles * num_batch_tiles == 1:
        if B >= 2:
            nB = pl.cdiv(B, 2)
            num_batch_tiles = pl.cdiv(B, nB)
        elif R > sub:
            half = _round_up(pl.cdiv(R, 2), sub)
            if half < R:
                tR = half
                num_row_tiles = pl.cdiv(R, tR)

    # ----- build the positional operand for the chosen layout ------------------
    # Direct-weight path (index=None, lane-aligned D, sublane-aligned tR): hand
    # the whole table to pallas_call and let the index_map pick rows [0, S) --
    # skips a wrapper-side slice pass over the table. NOTE: the edge row tile
    # may read real/clamped weight rows past S; they only pair with masked-out
    # output rows, which is benign for this elementwise op (do NOT inherit this
    # silently into a kernel with a reduction).
    direct_weight = want_direct_weight and (tR % sub == 0)
    if direct_weight:
        pos_arg = weight
    else:
        rows = pos_rows if pos_rows is not None else weight[:S]      # (S, D)
        if lane_fold:
            pos_arg = rows.reshape(R, C)
        elif pad_d:
            pos_arg = jnp.pad(rows, ((0, 0), (0, pad_d)))
        else:
            pos_arg = rows

    x_arg = x3
    if lane_fold:
        x_arg = x3.reshape(B, R, C)
    elif pad_d:
        x_arg = jnp.pad(x3, ((0, 0), (0, 0), (0, pad_d)))

    # ----- specs / grid --------------------------------------------------------
    if nB == 1:
        # Rows tiled, batch squeezed. B innermost: the pos block index is
        # unchanged across consecutive steps -> its DMA is elided and the table
        # is read from HBM once, not once per batch element.
        grid = (num_row_tiles, B)
        kernel = _add_rows_kernel
        in_specs = [
            pl.BlockSpec((None, tR, C), lambda s, b: (b, s, 0)),   # x
            pl.BlockSpec((tR, C), lambda s, b: (s, 0)),            # pos / weight
        ]
        out_specs = pl.BlockSpec((None, tR, C), lambda s, b: (b, s, 0))
        dims = ("parallel", "parallel")
    else:
        # Batch-packed blocks (small per-batch slab): tR == R here.
        grid = (num_batch_tiles,)
        kernel = _add_batched_kernel
        in_specs = [
            pl.BlockSpec((nB, R, C), lambda b: (b, 0, 0)),         # x
            pl.BlockSpec((R, C), lambda b: (0, 0)),                # pos / weight
        ]
        out_specs = pl.BlockSpec((nB, R, C), lambda b: (b, 0, 0))
        dims = ("parallel",)

    # ----- explicit scoped-VMEM limit (v5e default is only 16 MiB) -------------
    x_blk = nB * tR * C * itm_x
    o_blk = nB * tR * C * itm_o
    p_blk = tR * C * itm_w
    vmem_needed = 2 * (x_blk + o_blk + p_blk) + (8 << 20)   # dbl-buffer + headroom
    vmem_limit = int(min(max(vmem_needed, 32 << 20),
                         max(vmem_cap - (16 << 20), 32 << 20)))

    cost = pl.CostEstimate(
        flops=B * R * C,
        transcendentals=0,
        bytes_accessed=B * R * C * (itm_x + itm_o) + R * C * itm_w,
    )

    alias = {}
    if donate_x and out_dtype == x.dtype:
        alias = {0: 0}     # in-place add on x's (possibly folded/padded) buffer

    out = pl.pallas_call(
        kernel,
        out_shape=jax.ShapeDtypeStruct((B, R, C), out_dtype),
        grid=grid,
        in_specs=in_specs,
        out_specs=out_specs,
        compiler_params=pltpu.CompilerParams(
            dimension_semantics=dims,
            vmem_limit_bytes=vmem_limit,
        ),
        cost_estimate=cost,
        input_output_aliases=alias,
    )(x_arg, pos_arg)

    if lane_fold:
        out = out.reshape(B, S, D)
    elif pad_d:
        out = out[:, :, :D]
    return out.reshape(orig_shape)


if __name__ == "__main__":
    key = jax.random.PRNGKey(0)
    k = jax.random.split(key, 8)

    # 1) lane-fold path (D=32 folds to 128 lanes), f32, index=None and index.
    B, S, D, N = 2, 8, 32, 16
    x = jax.random.normal(k[0], (B, S, D), dtype=jnp.float32)
    w = jax.random.normal(k[1], (N, D), dtype=jnp.float32)
    out = jax.block_until_ready(learned_positional_embedding(x, w))
    ref = x + w[0:S]
    assert out.shape == ref.shape and out.dtype == ref.dtype
    assert jnp.allclose(out, ref, atol=1e-6), "lane-fold index=None mismatch"

    idx = jax.random.randint(k[2], (S,), 0, N)
    out_i = jax.block_until_ready(learned_positional_embedding(x, w, idx))
    ref_i = x + jnp.take(w, idx, axis=0)
    assert jnp.allclose(out_i, ref_i, atol=1e-6), "lane-fold index mismatch"

    # 2) direct-weight, already lane-dense, bf16 x + f32 table (promotion; also
    #    checks bf16-driven (16,128) sublane alignment).
    B2, S2, D2, N2 = 1, 16, 128, 32
    xb = jax.random.normal(k[3], (B2, S2, D2), dtype=jnp.bfloat16)
    wf = jax.random.normal(k[4], (N2, D2), dtype=jnp.float32)
    out2 = jax.block_until_ready(learned_positional_embedding(xb, wf))
    ref2 = xb + wf[0:S2]
    assert out2.dtype == ref2.dtype
    assert jnp.allclose(out2, ref2, atol=1e-6), "direct-weight path mismatch"

    # 3) batch-packed blocks (small per-batch slab) + input/output aliasing.
    B3, S3, D3, N3 = 8, 8, 128, 16
    x3 = jax.random.normal(k[5], (B3, S3, D3), dtype=jnp.float32)
    w3 = jax.random.normal(k[6], (N3, D3), dtype=jnp.float32)
    ref3 = x3 + w3[0:S3]                      # computed before the donated call
    out3 = jax.block_until_ready(
        learned_positional_embedding(x3, w3, donate_x=True))
    assert jnp.allclose(out3, ref3, atol=1e-6), "batch-packed path mismatch"

    # 4) odd-D pad path (D=20, S*D not lane-aligned -> pad to 128 lanes).
    B4, S4, D4, N4 = 2, 5, 20, 8
    x4 = jax.random.normal(k[7], (B4, S4, D4), dtype=jnp.float32)
    w4 = jax.random.normal(k[0], (N4, D4), dtype=jnp.float32)
    out4 = jax.block_until_ready(learned_positional_embedding(x4, w4))
    ref4 = x4 + w4[0:S4]
    assert out4.shape == ref4.shape
    assert jnp.allclose(out4, ref4, atol=1e-6), "odd-D pad path mismatch"

    # 5) single-batch, row-tiled path (>= 2 row tiles so both v7x TCs stream).
    B5, S5, D5, N5 = 1, 64, 256, 64
    x5 = jax.random.normal(k[1], (B5, S5, D5), dtype=jnp.float32)
    w5 = jax.random.normal(k[2], (N5, D5), dtype=jnp.float32)
    out5 = jax.block_until_ready(learned_positional_embedding(x5, w5))
    ref5 = x5 + w5[0:S5]
    assert jnp.allclose(out5, ref5, atol=1e-6), "row-tiled path mismatch"

    print("KERNEL_OK")
</pallas_src>

<mosaic_0001>
module attributes {stable_mosaic.version = 11 : i64} {
  func.func @_add_rows_kernel(%arg0: i32, %arg1: i32, %arg2: memref<1x2x128xf32, #tpu.memory_space<vmem>>, %arg3: memref<2x128xf32, #tpu.memory_space<vmem>>, %arg4: memref<1x2x128xf32, #tpu.memory_space<vmem>>) attributes {dimension_semantics = [#tpu.dimension_semantics<parallel>, #tpu.dimension_semantics<parallel>], iteration_bounds = array<i64: 1, 2>, scalar_prefetch = 0 : i64, scratch_operands = 0 : i64, tpu.core_type = #tpu.core_type<tc>, window_params = [{transform_indices = @transform_0, window_bounds = array<i64: 1, 2, 128>}, {transform_indices = @transform_1, window_bounds = array<i64: 2, 128>}, {transform_indices = @transform_2, window_bounds = array<i64: 1, 2, 128>}]} {
    %c0 = arith.constant 0 : index
    %c0_0 = arith.constant 0 : index
    %c0_1 = arith.constant 0 : index
    %0 = vector.load %arg2[%c0, %c0_0, %c0_1] : memref<1x2x128xf32, #tpu.memory_space<vmem>>, vector<1x2x128xf32>
    %1 = vector.shape_cast %0 : vector<1x2x128xf32> to vector<2x128xf32>
    %c0_2 = arith.constant 0 : index
    %c0_3 = arith.constant 0 : index
    %2 = vector.load %arg3[%c0_2, %c0_3] : memref<2x128xf32, #tpu.memory_space<vmem>>, vector<2x128xf32>
    %3 = arith.addf %1, %2 : vector<2x128xf32>
    %c0_4 = arith.constant 0 : index
    %c0_5 = arith.constant 0 : index
    %c0_6 = arith.constant 0 : index
    %4 = vector.load %arg4[%c0_4, %c0_5, %c0_6] : memref<1x2x128xf32, #tpu.memory_space<vmem>>, vector<1x2x128xf32>
    %5 = vector.shape_cast %4 : vector<1x2x128xf32> to vector<2x128xf32>
    %6 = vector.shape_cast %3 : vector<2x128xf32> to vector<1x2x128xf32>
    tpu.vector_store %arg4[%c0_4, %c0_5, %c0_6], %6 {strides = array<i32>} : memref<1x2x128xf32, #tpu.memory_space<vmem>>, vector<1x2x128xf32>,
    return
  }
  func.func @transform_0(%arg0: i32, %arg1: i32) -> (i32, i32, i32) {
    %c0_i32 = arith.constant 0 : i32
    %c0_i32_0 = arith.constant 0 : i32
    return %arg1, %arg0, %c0_i32 : i32, i32, i32
  }
  func.func @transform_1(%arg0: i32, %arg1: i32) -> (i32, i32) {
    %c0_i32 = arith.constant 0 : i32
    %c0_i32_0 = arith.constant 0 : i32
    return %arg0, %c0_i32 : i32, i32
  }
  func.func @transform_2(%arg0: i32, %arg1: i32) -> (i32, i32, i32) {
    %c0_i32 = arith.constant 0 : i32
    %c0_i32_0 = arith.constant 0 : i32
    return %arg1, %arg0, %c0_i32 : i32, i32, i32
  }
}

</mosaic_0001>

<bundles_post_ra>
// kernel: tpu_custom_call.1
= control target key start
LH: loop header
LB: loop body
LE: loop exit
PB: predicated region body
PF: predicated region fallthrough
CT: control target
= control target key end

     0   :  { %7 = vsyncpa [#allocation3], 0  ;;  %s714_s0 = inlined_call_operand.hbm [shape: f32[2,2,128], index: 0, kind: input, shape index: {}]   ;;  %s715_s1 = inlined_call_operand.hbm [shape: f32[2,128], index: 1, kind: input, shape index: {}]   ;;  %s716_s2 = inlined_call_operand.hbm [shape: f32[2,2,128], index: 2, kind: output, shape index: {}]  }
   0x1   :  { %9 = vsyncpa [#allocation3 + $0x1], 0 }
   0x2   :  { %10 = vsyncpa [#allocation6], 0 }
   0x3   :  { %11 = vsyncpa [#allocation4], 0 }
   0x4   :  { %13 = vsyncpa [#allocation4 + $0x1], 0  ;;  %s565_s9 = smov 0   ;;  %s567_s10 = smov 0  }
   0x5   :  { %s569_s11 = smov 0   ;;  %s571_s12 = smov 0  }
   0x6   :  { %s573_s13 = smov 0   ;;  %s575_s14 = smov 0  }
   0x7 LB: > { %s313_s15 = sadd.s32 4294967295, %s547_s14   ;;  %s314_s16 = sadd.s32 4294967294, %s547_s14   ;;  %s547_s14 = sphi %s575_s14, %s19_s14   ;;  %s543_s13 = sphi %s573_s13, %s728_s13   ;;  %s539_s12 = sphi %s571_s12, %s727_s12   ;;  %s535_s11 = sphi %s569_s11, %s726_s11   ;;  %s531_s10 = sphi %s567_s10, %s725_s10   ;;  %s527_s9 = sphi %s565_s9, %s724_s9  }
   0x8   : > { %p53_p0 = scmp.ne.s32.totalorder %s531_s10, %s527_s9  ;;  %p599_p1 = scmp.eq.s32.totalorder %s313_s15, 0 }
   0x9   : > { %p603_p2 = scmp.eq.s32.totalorder %s313_s15, 1  ;;  %p111_p3 = scmp.eq.s32.totalorder %s314_s16, 1 }
   0xa   : > { %p609_p4 = por %p599_p1, %p53_p0  ;;  %p315_p5 = scmp.ge.s32.totalorder %s547_s14, 1 }
   0xb   : > { %p614_p6 = por %p111_p3, %p53_p0  ;;  %p118_p7 = scmp.lt.s32.totalorder %s547_s14, 3 }
   0xc   : > { %s132_s23 = sshll.u32 %s715_s1, 4  ;;  %p317_p9 = scmp.ge.s32.totalorder %s547_s14, 2  ;;  %s133_s23 = int_to_ptr.hbm [resolvable:$true] %s132_s23 }
   0xd   : > { %p622_p8 = pnand %p315_p5, %p118_p7  ;;  %s549_s25 = smov [#allocation5]  }
   0xe   : > { %s134_s26 = sshll.u32 %s549_s25, 4  ;;  %s28_s27 = sadd.s32 1, %s543_s13  ;;  %s135_s26 = int_to_ptr.vmem [resolvable:$true] %s134_s26 }
   0xf   : > { %p336_p10 = pneg %p622_p8  ;;  %p29_p12 = scmp.ge.s32.totalorder %s28_s27, 2 }
  0x10   : > { %s40_s28 = sadd.s32 1, %s535_s11  ;;  %p47_p13 = scmp.ne.s32.totalorder %s535_s11, %s531_s10 }
  0x11   : > { %p337_p11 = pnand %p336_p10, %p599_p1  ;;  %p48_p0 = scmp.eq.s32.totalorder %s547_s14, 0 }
  0x12   : > { %s730_s27 = smov (%p29_p12, %s28_s27), 0  ;;  %p644_p5 = por %p603_p2, %p47_p13 }
  0x13   : > { %339 = dma.hbm_to_vmem [thread:$0]  (!%p337_p11), %s133_s23, 32, %s135_s26, [#allocation6]  }
  0x14   : > { %p638_p3 = por %p48_p0, %p47_p13  ;;  %s35_s3 = ssub.s32 %s543_s13, %s730_s27 }
  0x15   : > { %p349_p7 = scmp.lt.s32.totalorder %s547_s14, 2  ;;  %p38_p10 = scmp.eq.s32.totalorder %s35_s3, 0 }
  0x16   : > { %s145_s4 = sand.u32 1, %s535_s11   ;;  %s319_s7 = sshll.u32 %s543_s13, 1 }
  0x17   : > { %s318_s5 = sshll.u32 %s145_s4, 1  ;;  %s154_s16 = scalar_lea.hbm %s714_s0, %s319_s7 }
  0x18   : > { %s653_s6 = scalar_select %p38_p10, %s535_s11, %s40_s28  }
  0x19   : > { %s149_s21 = scalar_lea.vmem [#allocation2], %s318_s5  ;;  %s156_s18 = sshll.u32 %s154_s16, 4  ;;  %s157_s18 = int_to_ptr.hbm [resolvable:$true] %s156_s18 }
  0x1a   : > { %s158_s22 = sshll.u32 %s149_s21, 4  ;;  %p341_p2 = pnand %p349_p7, %p638_p3  ;;  %s159_s22 = int_to_ptr.vmem [resolvable:$true] %s158_s22 }
  0x1b   : > { %s146_s23 = scalar_lea.sflag [#allocation3], %s145_s4  ;;  %167 = sbr.rel (%p622_p8) target bundleno = 50 (0x32), region = 28 }
  0x1c   : > { %343 = dma.hbm_to_vmem [thread:$0]  (!%p341_p2), %s157_s18, 32, %s159_s22, %s146_s23  }
  0x1d   : > { %s664_s25 = sand.u32 (!%p622_p8), 1, %s531_s10  }
  0x1e   : > { %s321_s26 = sshll.u32 (!%p622_p8), %s664_s25, 1  ;;  %s170_s28 = scalar_lea.sflag (!%p622_p8), [#allocation3], %s664_s25 }
  0x1f   : > { %s173_s3 = scalar_lea.vmem (!%p622_p8), [#allocation2], %s321_s26 }
  0x20   : > { %514 = dma.done.wait (%p609_p4), %s170_s28, 32  }
  0x21   : > { %516 = vsyncadd (%p609_p4), %s170_s28, 4294967264 }
  0x22   : > { %518 = dma.done.wait (%p599_p1), [#allocation6], 32  }
  0x23   : > { %520 = vsyncadd (%p599_p1), [#allocation6], 4294967264  ;;  %s325_s24 = sshll.u32 %s539_s12, 1  ;;  %s199_s7 = scalar_lea.vmem [#allocation7], %s321_s26  ;;  %v200_v0 = vld [vmem:[%s173_s3] sm:$0x3] }
  0x24   : > { %s216_s5 = scalar_lea.hbm %s716_s2, %s325_s24  ;;  %s218_s8 = sshll.u32 %s199_s7, 4  ;;  %v201_v1 = vld [vmem:[#allocation5] sm:$0x3]  ;;  %s219_s8 = int_to_ptr.vmem [resolvable:$true] %s218_s8 }
  0x25   : > { %s220_s15 = sshll.u32 %s216_s5, 4  ;;  %v202_v2 = vadd.f32 %v201_v1, %v200_v0  ;;  %s205_s19 = scalar_lea.sflag [#allocation4], %s664_s25  ;;  %s221_s15 = int_to_ptr.hbm [resolvable:$true] %s220_s15 }
  0x26   : > { %s475_s17 = sshra.s32 %s221_s15, 4  ;;  %s481_s22 = scalar_lea.hbm %s716_s2, 4  ;;  %s476_s17 = int_to_ptr.hbm [resolvable:$true] %s475_s17 }
  0x27   : > { %203 = vst [vmem:[%s199_s7] sm:$0x3] %v202_v2  ;;  %s477_s16 = scalar_lea.hbm %s476_s17, 2  ;;  %p482_p11 = scmp.lt.s32.totalorder %s476_s17, %s716_s2 }
  0x28   : > { %p478_p1 = scmp.ne.s32.totalorder %s476_s17, %s477_s16  ;;  %p483_p12 = scmp.lt.s32.totalorder %s481_s22, %s477_s16 }
  0x2a   : > { %p479_p4 = pnand %p478_p1, %p644_p5  ;;  %p484_p13 = por %p483_p12, %p482_p11 }
  0x2c   : > { %p480_p8 = pneg %p479_p4 }
  0x2e   : > { %p485_p0 = pnand %p484_p13, %p480_p8 }
  0x30   : > { %488 = shalt.err (!%p485_p0)
}
  0x31   : > { %334 = dma.vmem_to_hbm [thread:$0]  (%p644_p5), %s219_s8, 32, %s221_s15, %s205_s19  }
  0x32 PF: > { %s232_s25 = sand.u32 1, %s527_s9   ;;  %p345_p3 = pnand %p317_p9, %p614_p6 }
  0x33   : > { %s233_s26 = scalar_lea.sflag [#allocation4], %s232_s25 }
  0x34   : > { %p346_p7 = pneg %p345_p3 }
  0x36   : > { %522 = dma.done.wait (%p346_p7), %s233_s26, 32  }
  0x37   : > { %524 = vsyncadd (%p346_p7), %s233_s26, 4294967264  ;;  %s19_s14 = sadd.s32 1, %s547_s14   ;;  %s724_s9 = smov %s531_s10 }
  0x38   : > { %p16_p10 = scmp.ge.s32.totalorder %s19_s14, 4   ;;  %s725_s10 = smov %s535_s11 }
  0x39   : > { %s726_s11 = smov %s653_s6  ;;  %s727_s12 = smov %s543_s13 }
  0x3a   : > { %s728_s13 = smov %s730_s27  ;;  %18 = sbr.rel (!%p16_p10) target bundleno = 7 (0x7), region = 78 }
  0x3f   :  { %239 = vsyncpa [#allocation3], 1 }
  0x40   :  { %241 = vsyncpa [#allocation3 + $0x1], 1 }
  0x41   :  { %242 = vsyncpa [#allocation6], 1 }
  0x42   :  { %243 = vsyncpa [#allocation4], 1 }
  0x43   :  { %245 = vsyncpa [#allocation4 + $0x1], 1 }

</bundles_post_ra>
